<compile_context>
chip_gen: v6e
topology: v6e:2x2x1
jax: 0.10.0
libtpu: 0.0.40
codegen_flags: <defaults>
</compile_context>

<pallas_src>
import functools

import jax
import jax.numpy as jnp
from jax.experimental import pallas as pl
from jax.experimental.pallas import tpu as pltpu


_MAX_UNROLL_LAYERS = 16
_LANE = 128
_SUBLANE = 8
# Plain Python float, NOT jnp.float32(...): a jnp scalar would be captured as
# a traced constant by the kernel and fail tracing.
_NEG_BIG = -1e30


def _round_up(n, m):
    return ((n + m - 1) // m) * m


def _pad_axis(a, axis, target):
    pad = target - a.shape[axis]
    if pad == 0:
        return a
    widths = [(0, 0)] * a.ndim
    widths[axis] = (0, pad)
    return jnp.pad(a, widths)


def _vmem_capacity_bytes():
    """Per-TensorCore VMEM capacity; conservative fallback = v7x (64 MiB)."""
    try:
        info = pltpu.get_tpu_info()
        cap = getattr(info, "vmem_capacity_bytes", None)
        if cap:
            return int(cap)
    except Exception:
        pass
    return 64 * 2**20


@functools.cache
def _single_buffer_supported():
    """One-time compile probe: does pipeline_mode=pl.Buffered(1) lower here?

    This replaces the previous broad try/except around the *real* kernel (which
    could mask genuine compile errors) with a cached capability check.
    """
    if not hasattr(pl, "Buffered"):
        return False

    def _copy(x_ref, o_ref):
        o_ref[...] = x_ref[...]

    try:
        fn = pl.pallas_call(
            _copy,
            out_shape=jax.ShapeDtypeStruct((8, 128), jnp.float32),
            grid=(2,),
            in_specs=[pl.BlockSpec((8, 128), lambda i: (0, 0),
                                   pipeline_mode=pl.Buffered(1))],
            out_specs=pl.BlockSpec((8, 128), lambda i: (0, 0)),
        )
        jax.jit(fn).lower(jnp.zeros((8, 128), jnp.float32)).compile()
        return True
    except Exception:  # probe only; real-kernel errors are never swallowed
        return False


# ----------------------------------------------------------------------------
# Kernels
# ----------------------------------------------------------------------------

def _softmax_store(logits, o_ref, valid_out):
    """Masked, numerically-stable softmax; divide goes to the EUP."""
    if valid_out < logits.shape[-1]:
        col = jax.lax.broadcasted_iota(jnp.int32, logits.shape, 1)
        logits = jnp.where(col < valid_out, logits, _NEG_BIG)
    m = jnp.max(logits, axis=-1, keepdims=True)
    e = jnp.exp(logits - m)
    denom = jnp.sum(e, axis=-1, keepdims=True)
    o_ref[...] = (e * pl.reciprocal(denom, approx=True)).astype(o_ref.dtype)


def _mlp_kernel_resident(x_ref, w_emb_ref, b_emb_ref, w_h_ref, b_h_ref,
                         w_out_ref, b_out_ref, o_ref, *,
                         layer_num, valid_out, unroll):
    """All weights VMEM-resident; one batch tile per grid step.

    x_ref [TB,Ip] f32/bf16, w_emb [Ip,Hp] bf16, b_emb [1,Hp] f32,
    w_h [L,Hp,Hp] bf16, b_h [L,1,Hp] f32, w_out [Hp,Op] bf16, b_out [1,Op] f32,
    o_ref [TB,Op] softmax probabilities.
    """
    cd = w_emb_ref.dtype  # MXU input dtype (bf16)

    # Embedding linear (f32 accumulation), then carry activation in bf16.
    h = (jnp.dot(x_ref[...].astype(cd), w_emb_ref[...],
                 preferred_element_type=jnp.float32)
         + b_emb_ref[...]).astype(cd)

    def ff(l, h):
        y = jnp.dot(h, w_h_ref[l], preferred_element_type=jnp.float32)
        y = y + b_h_ref[l]                      # [1,Hp] broadcast, f32
        return jnp.maximum(y, 0.0).astype(cd)   # single cast; halves live bytes

    if unroll:
        for l in range(layer_num):
            h = ff(l, h)
    else:
        h = jax.lax.fori_loop(0, layer_num, ff, h, unroll=2)

    logits = jnp.dot(h, w_out_ref[...],
                     preferred_element_type=jnp.float32) + b_out_ref[...]
    _softmax_store(logits, o_ref, valid_out)


def _mlp_kernel_streamed(x_ref, w_emb_ref, b_emb_ref, w_h_ref, b_h_ref,
                         w_out_ref, b_out_ref, o_ref, h_scratch, *,
                         layer_num, valid_out):
    """Hidden-layer weights streamed one layer at a time over grid axis 1.

    Grid = (batch tiles, layer_num). h carried across the layer axis in a VMEM
    scratch (bf16). Embedding runs at l==0, output+softmax at l==layer_num-1.
    Layer l+1's weight DMA overlaps layer l's matmul via BlockSpec pipelining.
    """
    cd = w_emb_ref.dtype
    l = pl.program_id(1)

    @pl.when(l == 0)
    def _():
        h0 = jnp.dot(x_ref[...].astype(cd), w_emb_ref[...],
                     preferred_element_type=jnp.float32) + b_emb_ref[...]
        h_scratch[...] = h0.astype(cd)

    y = jnp.dot(h_scratch[...], w_h_ref[0],
                preferred_element_type=jnp.float32) + b_h_ref[0]
    h_scratch[...] = jnp.maximum(y, 0.0).astype(cd)

    @pl.when(l == layer_num - 1)
    def _():
        logits = jnp.dot(h_scratch[...], w_out_ref[...],
                         preferred_element_type=jnp.float32) + b_out_ref[...]
        _softmax_store(logits, o_ref, valid_out)


# ----------------------------------------------------------------------------
# pallas_call wrapper
# ----------------------------------------------------------------------------

def _call_mlp(x, w_emb, b_emb, w_h, b_h, w_out, b_out, *,
              tile_b, layer_num, valid_out, out_dtype, streamed):
    Bp, Ip = x.shape
    Hp = w_emb.shape[1]
    Op = w_out.shape[1]
    Ls = w_h.shape[0]
    single_buffer = _single_buffer_supported()
    w_isz = jnp.dtype(w_emb.dtype).itemsize

    # ---- VMEM budget (derived from the chip, not a flat cap) ----------------
    usable = int(0.75 * _vmem_capacity_bytes())   # headroom for compiler scratch
    wbuf = 1 if single_buffer else 2
    const_w = (Ip * Hp + Hp * Op) * w_isz + (Hp + Op) * 4
    layer_w = Hp * Hp * w_isz + Hp * 4
    io_bytes = (2 * tile_b * Ip * jnp.dtype(x.dtype).itemsize
                + 2 * tile_b * Op * jnp.dtype(out_dtype).itemsize)
    live = tile_b * Hp * (4 + w_isz)              # f32 pre-activation + bf16 h
    if streamed:
        needed = (wbuf * const_w + 2 * layer_w + io_bytes
                  + tile_b * Hp * w_isz + live)
    else:
        needed = wbuf * (const_w + Ls * layer_w) + io_bytes + live
    vmem_limit = min(usable, max(32 * 2**20, int(needed * 1.4)))

    def const_spec(shape):
        idx = lambda *args: (0,) * len(shape)
        if single_buffer:
            # Grid-invariant operand: no need to double-buffer it in VMEM.
            return pl.BlockSpec(shape, idx, pipeline_mode=pl.Buffered(1))
        return pl.BlockSpec(shape, idx)

    if not streamed:
        grid = (Bp // tile_b,)
        in_specs = [
            pl.BlockSpec((tile_b, Ip), lambda i: (i, 0)),   # x moves with grid
            const_spec((Ip, Hp)),                           # w_emb
            const_spec((1, Hp)),                            # b_emb
            const_spec((Ls, Hp, Hp)),                       # w_h (resident)
            const_spec((Ls, 1, Hp)),                        # b_h
            const_spec((Hp, Op)),                           # w_out
            const_spec((1, Op)),                            # b_out
        ]
        out_specs = pl.BlockSpec((tile_b, Op), lambda i: (i, 0))
        scratch = []
        dims = ("parallel",)
        kernel = functools.partial(
            _mlp_kernel_resident, layer_num=layer_num, valid_out=valid_out,
            unroll=(layer_num <= _MAX_UNROLL_LAYERS))
    else:
        grid = (Bp // tile_b, layer_num)
        in_specs = [
            pl.BlockSpec((tile_b, Ip), lambda i, l: (i, 0)),
            const_spec((Ip, Hp)),
            const_spec((1, Hp)),
            pl.BlockSpec((1, Hp, Hp), lambda i, l: (l, 0, 0)),  # stream layer l
            pl.BlockSpec((1, 1, Hp), lambda i, l: (l, 0, 0)),
            const_spec((Hp, Op)),
            const_spec((1, Op)),
        ]
        out_specs = pl.BlockSpec((tile_b, Op), lambda i, l: (i, 0))
        scratch = [pltpu.VMEM((tile_b, Hp), w_emb.dtype)]     # carried h (bf16)
        dims = ("parallel", "arbitrary")
        kernel = functools.partial(
            _mlp_kernel_streamed, layer_num=layer_num, valid_out=valid_out)

    return pl.pallas_call(
        kernel,
        out_shape=jax.ShapeDtypeStruct((Bp, Op), out_dtype),
        grid_spec=pltpu.PrefetchScalarGridSpec(
            num_scalar_prefetch=0,
            grid=grid,
            in_specs=in_specs,
            out_specs=out_specs,
            scratch_shapes=scratch,
        ),
        compiler_params=pltpu.CompilerParams(
            dimension_semantics=dims,
            vmem_limit_bytes=vmem_limit),
    )(x, w_emb, b_emb, w_h, b_h, w_out, b_out)


# ----------------------------------------------------------------------------
# Public API
# ----------------------------------------------------------------------------

def prepare_params(params, *, compute_dtype=jnp.bfloat16):
    """Pad/cast the parameter pytree ONCE (call at init, not per forward).

    Feature dims are padded to multiples of 128 (lane width); weights go to
    `compute_dtype` (bf16) for the MXU, biases stay f32 and are pre-shaped so
    no per-layer broadcast op is emitted in the kernel.
    """
    I, H = params["w_emb"].shape
    L = params["w_h"].shape[0]
    O = params["w_out"].shape[1]
    Ip, Hp, Op = (_round_up(d, _LANE) for d in (I, H, O))

    w_emb = _pad_axis(_pad_axis(params["w_emb"].astype(compute_dtype), 0, Ip), 1, Hp)
    b_emb = _pad_axis(params["b_emb"].astype(jnp.float32), 0, Hp).reshape(1, Hp)
    if L > 0:
        w_h = _pad_axis(_pad_axis(params["w_h"].astype(compute_dtype), 1, Hp), 2, Hp)
        b_h = _pad_axis(params["b_h"].astype(jnp.float32), 1, Hp).reshape(L, 1, Hp)
    else:
        w_h = jnp.zeros((1, Hp, Hp), compute_dtype)
        b_h = jnp.zeros((1, 1, Hp), jnp.float32)
    w_out = _pad_axis(_pad_axis(params["w_out"].astype(compute_dtype), 0, Hp), 1, Op)
    b_out = _pad_axis(params["b_out"].astype(jnp.float32), 0, Op).reshape(1, Op)

    return {"w_emb": w_emb, "b_emb": b_emb, "w_h": w_h, "b_h": b_h,
            "w_out": w_out, "b_out": b_out,
            "meta": {"I": I, "H": H, "O": O, "L": L}}


def mlp_forward(x, prepared, *, tile_b=None, out_dtype=jnp.float32,
                force_streaming=None):
    """Fused MLP forward.

    x        : [B, input_size] (f32 or bf16; cast happens inside the kernel)
    prepared : output of prepare_params() (raw param dicts are accepted but
               get re-padded on every call — prefer preparing once).
    returns  : [B, output_size] softmax probabilities (out_dtype).
    """
    if "meta" not in prepared:
        prepared = prepare_params(prepared)
    meta = prepared["meta"]
    O, L = meta["O"], meta["L"]
    B = x.shape[0]
    Ip, Hp = prepared["w_emb"].shape
    Op = prepared["w_out"].shape[1]

    # Batch tile: prefer large tiles (up to 512 rows) but keep >=4 grid steps
    # (>=2 per TensorCore on megacore parts) so x/out DMAs overlap compute.
    if tile_b is None:
        tile_b = max(_SUBLANE, min(512, _round_up(pl.cdiv(B, 4), _SUBLANE)))
    assert tile_b % _SUBLANE == 0, "tile_b must be a multiple of 8"
    Bp = _round_up(B, tile_b)

    x_p = _pad_axis(_pad_axis(x, 1, Ip), 0, Bp)

    # Keep weights VMEM-resident when they fit comfortably; otherwise stream
    # the hidden-layer stack one layer at a time (the v7x 64 MiB/TC path).
    w_isz = jnp.dtype(prepared["w_emb"].dtype).itemsize
    resident_bytes = (prepared["w_h"].size + Ip * Hp + Hp * Op) * w_isz
    usable = int(0.75 * _vmem_capacity_bytes())
    if force_streaming is None:
        streamed = (L >= 2) and (resident_bytes > usable // 2)
    else:
        streamed = bool(force_streaming) and (L >= 1)

    out_p = _call_mlp(
        x_p, prepared["w_emb"], prepared["b_emb"], prepared["w_h"],
        prepared["b_h"], prepared["w_out"], prepared["b_out"],
        tile_b=tile_b, layer_num=L, valid_out=O, out_dtype=out_dtype,
        streamed=streamed)
    return out_p[:B, :O]


def init_params(key, input_size, output_size, hidden_dim, layer_num,
                param_dtype=jnp.bfloat16):
    """Init mimicking nn.Linear's U(-1/sqrt(fan_in), 1/sqrt(fan_in)).

    Weights stored [in_features, out_features] in `param_dtype`; biases f32.
    """
    keys = jax.random.split(key, 6)

    def uniform(k, shape, fan_in, dtype):
        bound = 1.0 / jnp.sqrt(jnp.float32(fan_in))
        return jax.random.uniform(k, shape, jnp.float32, -bound, bound).astype(dtype)

    return {
        "w_emb": uniform(keys[0], (input_size, hidden_dim), input_size, param_dtype),
        "b_emb": uniform(keys[1], (hidden_dim,), input_size, jnp.float32),
        "w_h":   uniform(keys[2], (layer_num, hidden_dim, hidden_dim), hidden_dim,
                         param_dtype),
        "b_h":   uniform(keys[3], (layer_num, hidden_dim), hidden_dim, jnp.float32),
        "w_out": uniform(keys[4], (hidden_dim, output_size), hidden_dim, param_dtype),
        "b_out": uniform(keys[5], (output_size,), hidden_dim, jnp.float32),
    }


def mlp_reference(x, params):
    """Pure-JAX reference matching the PyTorch forward (same bf16 compute dtype)."""
    cd = params["w_emb"].dtype

    def dot(a, w):
        return jnp.dot(a.astype(cd), w, preferred_element_type=jnp.float32)

    h = dot(x, params["w_emb"]) + params["b_emb"]
    for l in range(params["w_h"].shape[0]):
        h = jnp.maximum(dot(h, params["w_h"][l]) + params["b_h"][l], 0.0)
    logits = dot(h, params["w_out"]) + params["b_out"]
    return jax.nn.softmax(logits, axis=-1)


if __name__ == "__main__":
    key = jax.random.PRNGKey(0)
    k_x, k_p, k_x2, k_p2 = jax.random.split(key, 4)

    # MLP(input_size=16, output_size=8, hidden_dim=32, layer_num=2), batch 256.
    B, input_size, output_size, hidden_dim, layer_num = 256, 16, 8, 32, 2
    x = jax.random.normal(k_x, (B, input_size), jnp.float32)
    params = init_params(k_p, input_size, output_size, hidden_dim, layer_num)
    prepared = prepare_params(params)        # pad/cast weights once, not per call

    out = jax.block_until_ready(mlp_forward(x, prepared))
    ref = mlp_reference(x, params)
    assert out.shape == (B, output_size)
    # softmax rows sum to ~1 (EUP approx reciprocal in the kernel epilogue)
    assert jnp.allclose(jnp.sum(out, axis=-1), 1.0, atol=5e-3)
    assert jnp.allclose(out, ref, atol=5e-3, rtol=5e-3)

    # Also exercise the per-layer weight-streaming path (what large hidden
    # stacks take on v7x) at a slightly bigger shape, and verify numerics.
    B2, I2, O2, H2, L2 = 384, 64, 10, 256, 3
    x2 = jax.random.normal(k_x2, (B2, I2), jnp.float32)
    params2 = init_params(k_p2, I2, O2, H2, L2)
    prepared2 = prepare_params(params2)
    out2 = jax.block_until_ready(mlp_forward(x2, prepared2, force_streaming=True))
    ref2 = mlp_reference(x2, params2)
    assert out2.shape == (B2, O2)
    assert jnp.allclose(out2, ref2, atol=5e-3, rtol=5e-3)

    print("KERNEL_OK")
</pallas_src>

<mosaic_0001>
module attributes {stable_mosaic.version = 11 : i64} {
  func.func @_mlp_kernel_resident(%arg0: i32, %arg1: memref<64x128xf32, #tpu.memory_space<vmem>>, %arg2: memref<128x128xbf16, #tpu.memory_space<vmem>>, %arg3: memref<1x128xf32, #tpu.memory_space<vmem>>, %arg4: memref<2x128x128xbf16, #tpu.memory_space<vmem>>, %arg5: memref<2x1x128xf32, #tpu.memory_space<vmem>>, %arg6: memref<128x128xbf16, #tpu.memory_space<vmem>>, %arg7: memref<1x128xf32, #tpu.memory_space<vmem>>, %arg8: memref<64x128xf32, #tpu.memory_space<vmem>>) attributes {dimension_semantics = [#tpu.dimension_semantics<parallel>], iteration_bounds = array<i64: 4>, scalar_prefetch = 0 : i64, scratch_operands = 0 : i64, tpu.core_type = #tpu.core_type<tc>, window_params = [{transform_indices = @transform_0, window_bounds = array<i64: 64, 128>}, {pipeline_mode = #tpu.pipeline_mode<synchronous>, transform_indices = @transform_1, window_bounds = array<i64: 128, 128>}, {pipeline_mode = #tpu.pipeline_mode<synchronous>, transform_indices = @transform_2, window_bounds = array<i64: 1, 128>}, {pipeline_mode = #tpu.pipeline_mode<synchronous>, transform_indices = @transform_3, window_bounds = array<i64: 2, 128, 128>}, {pipeline_mode = #tpu.pipeline_mode<synchronous>, transform_indices = @transform_4, window_bounds = array<i64: 2, 1, 128>}, {pipeline_mode = #tpu.pipeline_mode<synchronous>, transform_indices = @transform_5, window_bounds = array<i64: 128, 128>}, {pipeline_mode = #tpu.pipeline_mode<synchronous>, transform_indices = @transform_6, window_bounds = array<i64: 1, 128>}, {transform_indices = @transform_7, window_bounds = array<i64: 64, 128>}]} {
    %c0 = arith.constant 0 : index
    %c0_0 = arith.constant 0 : index
    %0 = vector.load %arg1[%c0, %c0_0] : memref<64x128xf32, #tpu.memory_space<vmem>>, vector<64x128xf32>
    %1 = arith.truncf %0 : vector<64x128xf32> to vector<64x128xbf16>
    %c0_1 = arith.constant 0 : index
    %c0_2 = arith.constant 0 : index
    %2 = vector.load %arg2[%c0_1, %c0_2] : memref<128x128xbf16, #tpu.memory_space<vmem>>, vector<128x128xbf16>
    %cst = arith.constant dense<0.000000e+00> : vector<64x128xf32>
    %3 = tpu.matmul %1, %2, %cst {dimension_numbers = #tpu.dot_dimension_numbers<[1], [0], [0], [1], [0, 0, 1, 1], [], []>} : vector<64x128xbf16>, vector<128x128xbf16>, vector<64x128xf32> -> vector<64x128xf32>
    %c0_3 = arith.constant 0 : index
    %c0_4 = arith.constant 0 : index
    %4 = vector.load %arg3[%c0_3, %c0_4] : memref<1x128xf32, #tpu.memory_space<vmem>>, vector<1x128xf32>
    %5 = vector.broadcast %4 : vector<1x128xf32> to vector<64x128xf32>
    %6 = arith.addf %3, %5 : vector<64x128xf32>
    %7 = arith.truncf %6 : vector<64x128xf32> to vector<64x128xbf16>
    %c0_5 = arith.constant 0 : index
    %c0_6 = arith.constant 0 : index
    %c0_7 = arith.constant 0 : index
    %8 = vector.load %arg4[%c0_5, %c0_6, %c0_7] : memref<2x128x128xbf16, #tpu.memory_space<vmem>>, vector<1x128x128xbf16>
    %9 = vector.shape_cast %8 : vector<1x128x128xbf16> to vector<128x128xbf16>
    %cst_8 = arith.constant dense<0.000000e+00> : vector<64x128xf32>
    %10 = tpu.matmul %7, %9, %cst_8 {dimension_numbers = #tpu.dot_dimension_numbers<[1], [0], [0], [1], [0, 0, 1, 1], [], []>} : vector<64x128xbf16>, vector<128x128xbf16>, vector<64x128xf32> -> vector<64x128xf32>
    %c0_9 = arith.constant 0 : index
    %c0_10 = arith.constant 0 : index
    %c0_11 = arith.constant 0 : index
    %11 = vector.load %arg5[%c0_9, %c0_10, %c0_11] : memref<2x1x128xf32, #tpu.memory_space<vmem>>, vector<1x1x128xf32>
    %12 = vector.shape_cast %11 : vector<1x1x128xf32> to vector<1x128xf32>
    %13 = vector.broadcast %12 : vector<1x128xf32> to vector<64x128xf32>
    %14 = arith.addf %10, %13 : vector<64x128xf32>
    %cst_12 = arith.constant 0.000000e+00 : f32
    %15 = vector.broadcast %cst_12 : f32 to vector<64x128xf32>
    %16 = arith.maximumf %14, %15 : vector<64x128xf32>
    %17 = arith.truncf %16 : vector<64x128xf32> to vector<64x128xbf16>
    %c1 = arith.constant 1 : index
    %c0_13 = arith.constant 0 : index
    %c0_14 = arith.constant 0 : index
    %18 = vector.load %arg4[%c1, %c0_13, %c0_14] : memref<2x128x128xbf16, #tpu.memory_space<vmem>>, vector<1x128x128xbf16>
    %19 = vector.shape_cast %18 : vector<1x128x128xbf16> to vector<128x128xbf16>
    %cst_15 = arith.constant dense<0.000000e+00> : vector<64x128xf32>
    %20 = tpu.matmul %17, %19, %cst_15 {dimension_numbers = #tpu.dot_dimension_numbers<[1], [0], [0], [1], [0, 0, 1, 1], [], []>} : vector<64x128xbf16>, vector<128x128xbf16>, vector<64x128xf32> -> vector<64x128xf32>
    %c1_16 = arith.constant 1 : index
    %c0_17 = arith.constant 0 : index
    %c0_18 = arith.constant 0 : index
    %21 = vector.load %arg5[%c1_16, %c0_17, %c0_18] : memref<2x1x128xf32, #tpu.memory_space<vmem>>, vector<1x1x128xf32>
    %22 = vector.shape_cast %21 : vector<1x1x128xf32> to vector<1x128xf32>
    %23 = vector.broadcast %22 : vector<1x128xf32> to vector<64x128xf32>
    %24 = arith.addf %20, %23 : vector<64x128xf32>
    %cst_19 = arith.constant 0.000000e+00 : f32
    %25 = vector.broadcast %cst_19 : f32 to vector<64x128xf32>
    %26 = arith.maximumf %24, %25 : vector<64x128xf32>
    %27 = arith.truncf %26 : vector<64x128xf32> to vector<64x128xbf16>
    %c0_20 = arith.constant 0 : index
    %c0_21 = arith.constant 0 : index
    %28 = vector.load %arg6[%c0_20, %c0_21] : memref<128x128xbf16, #tpu.memory_space<vmem>>, vector<128x128xbf16>
    %cst_22 = arith.constant dense<0.000000e+00> : vector<64x128xf32>
    %29 = tpu.matmul %27, %28, %cst_22 {dimension_numbers = #tpu.dot_dimension_numbers<[1], [0], [0], [1], [0, 0, 1, 1], [], []>} : vector<64x128xbf16>, vector<128x128xbf16>, vector<64x128xf32> -> vector<64x128xf32>
    %c0_23 = arith.constant 0 : index
    %c0_24 = arith.constant 0 : index
    %30 = vector.load %arg7[%c0_23, %c0_24] : memref<1x128xf32, #tpu.memory_space<vmem>>, vector<1x128xf32>
    %31 = vector.broadcast %30 : vector<1x128xf32> to vector<64x128xf32>
    %32 = arith.addf %29, %31 : vector<64x128xf32>
    %33 = tpu.iota {dimensions = array<i32: 1>} : vector<64x128xi32>
    %c8_i32 = arith.constant 8 : i32
    %34 = vector.broadcast %c8_i32 : i32 to vector<64x128xi32>
    %35 = arith.cmpi slt, %33, %34 : vector<64x128xi32>
    %cst_25 = arith.constant -1.000000e+30 : f32
    %36 = vector.broadcast %cst_25 : f32 to vector<64x128xf32>
    %37 = arith.select %35, %32, %36 : vector<64x128xi1>, vector<64x128xf32>
    %cst_26 = arith.constant dense<0xFF800000> : vector<64xf32>
    %38 = vector.multi_reduction <maximumf>, %37, %cst_26 [1] : vector<64x128xf32> to vector<64xf32>
    %39 = vector.shape_cast %38 : vector<64xf32> to vector<64x1xf32>
    %40 = vector.broadcast %39 : vector<64x1xf32> to vector<64x128xf32>
    %41 = arith.subf %37, %40 : vector<64x128xf32>
    %42 = math.exp %41 : vector<64x128xf32>
    %cst_27 = arith.constant dense<0.000000e+00> : vector<64xf32>
    %43 = vector.multi_reduction <add>, %42, %cst_27 [1] : vector<64x128xf32> to vector<64xf32>
    %44 = vector.shape_cast %43 : vector<64xf32> to vector<64x1xf32>
    %45 = tpu.reciprocal %44 {approx = true} : vector<64x1xf32> -> vector<64x1xf32>
    %46 = vector.broadcast %45 : vector<64x1xf32> to vector<64x128xf32>
    %47 = arith.mulf %42, %46 : vector<64x128xf32>
    %c0_28 = arith.constant 0 : index
    %c0_29 = arith.constant 0 : index
    %48 = vector.load %arg8[%c0_28, %c0_29] : memref<64x128xf32, #tpu.memory_space<vmem>>, vector<64x128xf32>
    tpu.vector_store %arg8[%c0_28, %c0_29], %47 {strides = array<i32>} : memref<64x128xf32, #tpu.memory_space<vmem>>, vector<64x128xf32>,
    return
  }
  func.func @transform_0(%arg0: i32) -> (i32, i32) {
    %c0_i32 = arith.constant 0 : i32
    %c0_i32_0 = arith.constant 0 : i32
    return %arg0, %c0_i32 : i32, i32
  }
  func.func @transform_1(%arg0: i32) -> (i32, i32) {
    %c0_i32 = arith.constant 0 : i32
    %c0_i32_0 = arith.constant 0 : i32
    %c0_i32_1 = arith.constant 0 : i32
    return %c0_i32, %c0_i32_0 : i32, i32
  }
  func.func @transform_2(%arg0: i32) -> (i32, i32) {
    %c0_i32 = arith.constant 0 : i32
    %c0_i32_0 = arith.constant 0 : i32
    %c0_i32_1 = arith.constant 0 : i32
    return %c0_i32, %c0_i32_0 : i32, i32
  }
  func.func @transform_3(%arg0: i32) -> (i32, i32, i32) {
    %c0_i32 = arith.constant 0 : i32
    %c0_i32_0 = arith.constant 0 : i32
    %c0_i32_1 = arith.constant 0 : i32
    %c0_i32_2 = arith.constant 0 : i32
    return %c0_i32, %c0_i32_0, %c0_i32_1 : i32, i32, i32
  }
  func.func @transform_4(%arg0: i32) -> (i32, i32, i32) {
    %c0_i32 = arith.constant 0 : i32
    %c0_i32_0 = arith.constant 0 : i32
    %c0_i32_1 = arith.constant 0 : i32
    %c0_i32_2 = arith.constant 0 : i32
    return %c0_i32, %c0_i32_0, %c0_i32_1 : i32, i32, i32
  }
  func.func @transform_5(%arg0: i32) -> (i32, i32) {
    %c0_i32 = arith.constant 0 : i32
    %c0_i32_0 = arith.constant 0 : i32
    %c0_i32_1 = arith.constant 0 : i32
    return %c0_i32, %c0_i32_0 : i32, i32
  }
  func.func @transform_6(%arg0: i32) -> (i32, i32) {
    %c0_i32 = arith.constant 0 : i32
    %c0_i32_0 = arith.constant 0 : i32
    %c0_i32_1 = arith.constant 0 : i32
    return %c0_i32, %c0_i32_0 : i32, i32
  }
  func.func @transform_7(%arg0: i32) -> (i32, i32) {
    %c0_i32 = arith.constant 0 : i32
    %c0_i32_0 = arith.constant 0 : i32
    return %arg0, %c0_i32 : i32, i32
  }
}

</mosaic_0001>

<bundles_post_ra>
// kernel: tpu_custom_call.1
= control target key start
LH: loop header
LB: loop body
LE: loop exit
PB: predicated region body
PF: predicated region fallthrough
CT: control target
= control target key end

     0   :  { %s1950_s0 = inlined_call_operand.hbm [shape: f32[256,128], index: 0, kind: input, shape index: {}]   ;;  %s1951_s1 = inlined_call_operand.hbm [shape: bf16[128,128], index: 1, kind: input, shape index: {}]   ;;  %s1952_s2 = inlined_call_operand.vmem [shape: f32[1,128], index: 2, kind: input, shape index: {}]   ;;  %s1953_s3 = inlined_call_operand.hbm [shape: bf16[2,128,128], index: 3, kind: input, shape index: {}]   ;;  %s1954_s4 = inlined_call_operand.vmem [shape: f32[2,1,128], index: 4, kind: input, shape index: {}]   ;;  %s1955_s5 = inlined_call_operand.hbm [shape: bf16[128,128], index: 5, kind: input, shape index: {}]   ;;  %s1956_s6 = inlined_call_operand.vmem [shape: f32[1,128], index: 6, kind: input, shape index: {}]   ;;  %s1957_s7 = inlined_call_operand.hbm [shape: f32[256,128], index: 7, kind: output, shape index: {}]  }
   0x1   :  { %1962 = sst [smem:[#allocation15_spill]] %s1951_s1 }
   0x2   :  { %12 = vsyncpa [#allocation3], 0 }
   0x3   :  { %14 = vsyncpa [#allocation3 + $0x1], 0 }
   0x4   :  { %15 = vsyncpa [#allocation6], 0 }
   0x5   :  { %16 = vsyncpa [#allocation9], 0 }
   0x6   :  { %17 = vsyncpa [#allocation4], 0 }
   0x7   :  { %19 = vsyncpa [#allocation4 + $0x1], 0  ;;  %s1718_s24 = smov 0   ;;  %s1720_s25 = smov 0  }
   0x8   :  { %s1722_s26 = smov 0   ;;  %s1724_s27 = smov 0  }
   0x9 LB: > { %s1739_s28 = sadd.s32 4294967295, %s1665_s27   ;;  %s1137_s29 = sadd.s32 4294967294, %s1665_s27   ;;  %s1665_s27 = sphi %s1724_s27, %s1982_s27   ;;  %s1661_s26 = sphi %s1722_s26, %s1981_s26   ;;  %s1657_s25 = sphi %s1720_s25, %s1980_s25   ;;  %s1653_s24 = sphi %s1718_s24, %s1979_s24  }
   0xa   : > { %p45_p0 = scmp.ne.s32.totalorder %s1657_s25, %s1653_s24  ;;  %p1958_p1 = scmp.eq.s32.totalorder %s1739_s28, 0 }
   0xb   : > { %p201_p3 = scmp.eq.s32.totalorder %s1137_s29, 3  ;;  %p1138_p5 = scmp.ge.s32.totalorder %s1665_s27, 1 }
   0xc   : > { %p1748_p4 = por %p1958_p1, %p45_p0  ;;  %p208_p7 = scmp.lt.s32.totalorder %s1665_s27, 5 }
   0xd   : > { %p1753_p6 = por %p201_p3, %p45_p0  ;;  %s1667_s10 = smov [#allocation5]  }
   0xe   : > { %s1963_s30 = scalar_select %p1748_p4, 1, 0 }
   0xf   : > { %s1964_s8 = scalar_select %p1753_p6, 1, 0 }
  0x10   : > { %p1758_p8 = pnand %p1138_p5, %p208_p7  ;;  %s220_s11 = sshll.u32 %s1667_s10, 4  ;;  %s221_s11 = int_to_ptr.vmem [resolvable:$true] %s220_s11 }
  0x11   : > { %s1668_s13 = smov [#allocation7]   ;;  %s1669_s15 = smov [#allocation8]  }
  0x12   : > { %s1965_s9 = scalar_select %p1758_p8, 1, 0 }
  0x13   : > { %p1356_p9 = pneg %p1758_p8  ;;  %s236_s14 = sshll.u32 %s1668_s13, 4  ;;  %s237_s14 = int_to_ptr.vmem [resolvable:$true] %s236_s14 }
  0x14   : > { %s252_s16 = sshll.u32 %s1669_s15, 4  ;;  %s1498_s17 = scalar_lea.vmem %s221_s11, 1024  ;;  %s253_s16 = int_to_ptr.vmem [resolvable:$true] %s252_s16 }
  0x15   : > { %p1766_p10 = pnand %p1356_p9, %p1958_p1  ;;  %p1499_p12 = scmp.ne.s32.totalorder %s221_s11, %s1498_s17 }
  0x16   : > { %p1506_p3 = scmp.lt.s32.totalorder %s221_s11, %s221_s11  ;;  %p1507_p5 = scmp.lt.s32.totalorder %s1498_s17, %s1498_s17 }
  0x17   : > { %p1489_p11 = pneg %p1766_p10 }
  0x18   : > { %p1508_p7 = por %p1507_p5, %p1506_p3 }
  0x19   : > { %p1501_p13 = pnand %p1499_p12, %p1489_p11 }
  0x1b   : > { %p1502_p0 = pneg %p1501_p13 }
  0x1d   : > { %p1509_p9 = pnand %p1508_p7, %p1502_p0 }
  0x1f   : > { %1512 = shalt.err (!%p1509_p9)
}
  0x20   : > { %s1670_s18 = smov 64   ;;  %s1671_s19 = smov 4  }
  0x21   : > { %s1967_s1 = sld [smem:[#allocation15_spill]]  ;;  %s1524_s22 = scalar_lea.vmem %s237_s14, 2048 }
  0x22   : > { %p1525_p1 = scmp.ne.s32.totalorder %s237_s14, %s1524_s22  ;;  %p1532_p2 = scmp.lt.s32.totalorder %s237_s14, %s237_s14 }
  0x23   : > { %p1533_p6 = scmp.lt.s32.totalorder %s1524_s22, %s1524_s22 }
  0x24   : > { %p1527_p12 = pnand %p1525_p1, %p1489_p11 }
  0x25   : > { %p1534_p3 = por %p1533_p6, %p1532_p2 }
  0x26   : > { %p1528_p13 = pneg %p1527_p12 }
  0x27   : > { %1359 = dma.hbm_to_vmem [thread:$0]  (!%p1766_p10), %s1967_s1, 1024, %s221_s11, [#allocation6], %s1670_s18, %s1670_s18, %s1671_s19  }
  0x28   : > { %p1535_p0 = pnand %p1534_p3, %p1528_p13 }
  0x2a   : > { %1538 = shalt.err (!%p1535_p0)
}
  0x2b   : > { %1362 = dma.hbm_to_vmem [thread:$0]  (!%p1766_p10), %s1953_s3, 2048, %s237_s14, [#allocation6], %s1670_s18, %s1670_s18, %s1671_s19  }
  0x2c   : > { %s1550_s10 = scalar_lea.vmem %s253_s16, 1024  ;;  %p1558_p9 = scmp.lt.s32.totalorder %s253_s16, %s253_s16 }
  0x2d   : > { %p1551_p5 = scmp.ne.s32.totalorder %s253_s16, %s1550_s10  ;;  %p1559_p12 = scmp.lt.s32.totalorder %s1550_s10, %s1550_s10 }
  0x2f   : > { %p1553_p7 = pnand %p1551_p5, %p1489_p11  ;;  %p1560_p4 = por %p1559_p12, %p1558_p9 }
  0x31   : > { %p1554_p1 = pneg %p1553_p7 }
  0x33   : > { %p1561_p2 = pnand %p1560_p4, %p1554_p1 }
  0x35   : > { %1564 = shalt.err (!%p1561_p2)
}
  0x36   : > { %1365 = dma.hbm_to_vmem [thread:$0]  (!%p1766_p10), %s1955_s5, 1024, %s253_s16, [#allocation9], %s1670_s18, %s1670_s18, %s1671_s19  }
  0x37   : > { %s1797_s14 = sadd.s32 1, %s1665_s27   ;;  %s32_s12 = sadd.s32 1, %s1661_s26 }
  0x38   : > { %s29_s15 = ssub.s32 %s1665_s27, %s1797_s14  ;;  %p39_p6 = scmp.ne.s32.totalorder %s1661_s26, %s1657_s25 }
  0x39   : > { %p30_p4 = scmp.eq.s32.totalorder %s29_s15, 0  ;;  %p40_p11 = scmp.eq.s32.totalorder %s1665_s27, 0 }
  0x3a   : > { %p1377_p13 = scmp.lt.s32.totalorder %s1665_s27, 4  ;;  %p1968_p0 = scmp.eq.s32.totalorder %s1739_s28, 3 }
  0x3b   : > { %s1807_s17 = scalar_select %p30_p4, %s1661_s26, %s32_s12  }
  0x3c   : > { %p41_p3 = por %p40_p11, %p39_p6  ;;  %p1811_p5 = por %p1968_p0, %p39_p6 }
  0x3d   : > { %s269_s21 = sand.u32 1, %s1661_s26   ;;  %s1194_s22 = sshll.u32 %s1665_s27, 10 }
  0x3e   : > { %s1969_s20 = scalar_select %p1811_p5, 1, 0 }
  0x3f   : > { %s1143_s16 = sshll.u32 %s269_s21, 6  ;;  %s1820_s23 = scalar_lea.hbm %s1950_s0, %s1194_s22 }
  0x40   : > { %s273_s29 = scalar_lea.vmem [#allocation2], %s1143_s16  ;;  %p1822_p10 = pnand %p1377_p13, %p41_p3 }
  0x41   : > { %s280_s10 = sshll.u32 %s273_s29, 4  ;;  %s1828_s13 = scalar_lea.sflag [#allocation3], %s269_s21  ;;  %s1826_s10 = int_to_ptr.vmem [resolvable:$true] %s280_s10 }
  0x42   : > { %s1565_s15 = scalar_lea.hbm %s1820_s23, 1024  ;;  %p1567_p1 = pneg %p1822_p10 }
  0x43   : > { %p1566_p7 = scmp.ne.s32.totalorder %s1820_s23, %s1565_s15  ;;  %s1570_s16 = scalar_lea.hbm %s1950_s0, 4096 }
  0x44   : > { %p1571_p2 = scmp.lt.s32.totalorder %s1820_s23, %s1950_s0  ;;  %p1572_p4 = scmp.lt.s32.totalorder %s1570_s16, %s1565_s15 }
  0x45   : > { %p1568_p9 = pnand %p1567_p1, %p1566_p7 }
  0x46   : > { %p1573_p6 = por %p1572_p4, %p1571_p2 }
  0x47   : > { %p1569_p12 = pneg %p1568_p9 }
  0x49   : > { %p1574_p11 = pnand %p1573_p6, %p1569_p12 }
  0x4b   : > { %1577 = shalt.err (!%p1574_p11)
}
  0x4c   : > { %s1578_s21 = scalar_lea.vmem %s1826_s10, 1024  ;;  %s1672_s29 = smov [#allocation2]  }
  0x4d   : > { %p1579_p13 = scmp.ne.s32.totalorder %s1826_s10, %s1578_s21  ;;  %s1583_s1 = sshll.u32 %s1672_s29, 4  ;;  %s1584_s1 = int_to_ptr.vmem [resolvable:$false] %s1583_s1 }
  0x4e   : > { %s1585_s12 = scalar_lea.vmem %s1584_s1, 2048  ;;  %p1586_p7 = scmp.lt.s32.totalorder %s1826_s10, %s1584_s1 }
  0x4f   : > { %p1581_p3 = pnand %p1579_p13, %p1567_p1  ;;  %p1587_p9 = scmp.lt.s32.totalorder %s1585_s12, %s1578_s21 }
  0x51   : > { %p1582_p0 = pneg %p1581_p3  ;;  %p1588_p5 = por %p1587_p9, %p1586_p7 }
  0x53   : > { %p1589_p8 = pnand %p1588_p5, %p1582_p0 }
  0x55   : > { %1592 = shalt.err (!%p1589_p8)
}
  0x56   : > { %s1673_s15 = smov 128   ;;  %s1674_s22 = smov 8  }
  0x57   : > { %1369 = dma.hbm_to_vmem [thread:$0]  (!%p1822_p10), %s1820_s23, 1024, %s1826_s10, %s1828_s13, %s1673_s15, %s1673_s15, %s1674_s22  }
  0x58   : > { %p1971_p1 = scmp.ne.s32.totalorder %s1965_s9, 0 }
  0x59   : > { %s1852_s16 = sand.u32 (!%p1971_p1), 1, %s1657_s25   ;;  %p1972_p8 = scmp.ne.s32.totalorder (!%p1971_p1), %s1963_s30, 0 }
  0x5a   : > { %292 = sbr.rel (%p1971_p1) target bundleno = 1289 (0x509), region = 48  ;;  %s1147_s1 = sshll.u32 (!%p1971_p1), %s1852_s16, 6 }
  0x5b   : > { %s295_s18 = scalar_lea.sflag (!%p1971_p1), [#allocation3], %s1852_s16  ;;  %s1858_s19 = scalar_lea.vmem (!%p1971_p1), [#allocation2], %s1147_s1 }
  0x5f   : > { %1636 = dma.done.wait (%p1972_p8), %s295_s18, 1024  }
  0x60   : > { %1638 = vsyncadd (%p1972_p8), %s295_s18, 4294966272  ;;  %p1973_p5 = scmp.eq.s32.totalorder %s1739_s28, 0 }
  0x62   : > { %1640 = dma.done.wait (%p1973_p5), [#allocation6], 3072   ;;  %p1974_p10 = pmov %p1973_p5 }
  0x63   : > { %p1975_p12 = pmov %p1973_p5 }
  0x64   : > { %1642 = vsyncadd (%p1974_p10), [#allocation6], 4294964224 }
  0x65   : > { %1644 = dma.done.wait (%p1975_p12), [#allocation9], 1024   ;;  %p1976_p2 = pmov %p1973_p5 }
  0x66   : > { %v1423_v0 = vld [vmem:[#allocation5 + $0x38] sm:$0xff]   ;;  %v1424_v1 = vld [vmem:[#allocation5 + $0x30] sm:$0xff]   ;;  %v1425_v2 = vld [vmem:[#allocation5 + $0x28] sm:$0xff]   ;;  %s340_s12 = scalar_lea.vmem [#allocation10], %s1147_s1  ;;  %s1195_s15 = sshll.u32 %s1739_s28, 10 }
  0x67   : > { %1646 = vsyncadd (%p1976_p2), [#allocation9], 4294966272  ;;  %1244 = vmatprep.subr.bf16.mxu0 %v1423_v0  ;;  %v1426_v3 = vld [vmem:[#allocation5 + $0x20] sm:$0xff]   ;;  %v345_v5 = vld [vmem:[%s1858_s19 + $0x8] sm:$0xff]  ;;  %s1035_s22 = sshll.u32 %s340_s12, 4  ;;  %s1022_s30 = scalar_lea.sflag [#allocation4], %s1852_s16  ;;  %s1908_s22 = int_to_ptr.vmem [resolvable:$true] %s1035_s22 }
  0x68   : > { %1245 = vmatpush3.bf16.msra.mxu0 %v1423_v0  ;;  %v344_v4 = vld [vmem:[%s1858_s19] sm:$0xff]  ;;  %v1427_v7 = vld [vmem:[#allocation5 + $0x18] sm:$0xff]   ;;  %v1432_v9 = vld [vmem:[#allocation7 + $0x30] sm:$0xff]   ;;  %s1593_s9 = scalar_lea.vmem %s1908_s22, 1024  ;;  %p1977_p6 = scmp.ne.s32.totalorder %s1969_s20, 0 }
  0x69   : > { %1246 = vmatprep.subr.bf16.mxu0 %v1424_v1  ;;  %v352_v6 = vpack.c.bf16 %v345_v5, %v344_v4  ;;  %v1431_v8 = vld [vmem:[#allocation7 + $0x38] sm:$0xff]   ;;  %v1428_v10 = vld [vmem:[#allocation5 + $0x10] sm:$0xff]   ;;  %v1433_v11 = vld [vmem:[#allocation7 + $0x28] sm:$0xff]   ;;  %p1594_p4 = scmp.ne.s32.totalorder %s1908_s22, %s1593_s9  ;;  %s1675_s28 = smov [#allocation10]  }
  0x6a   : > { %1268 = vmatprep.subr.bf16.mxu1 %v1431_v8  ;;  %v1434_v12 = vld [vmem:[#allocation7 + $0x20] sm:$0xff]   ;;  %v1429_v13 = vld [vmem:[#allocation5 + $0x8] sm:$0xff]   ;;  %v1435_v14 = vld [vmem:[#allocation7 + $0x18] sm:$0xff]   ;;  %s1597_s23 = sshll.u32 %s1675_s28, 4  ;;  %s1598_s23 = int_to_ptr.vmem [resolvable:$false] %s1597_s23 }
  0x6b   : > { %1260 = vmatprep.mubr.bf16.mxu0 %v352_v6  ;;  %1269 = vmatpush3.bf16.msra.mxu1 %v1431_v8  ;;  %v1430_v15 = vld [vmem:[#allocation5] sm:$0xff]   ;;  %v346_v16 = vld [vmem:[%s1858_s19 + $0x10] sm:$0xff]  ;;  %v347_v17 = vld [vmem:[%s1858_s19 + $0x18] sm:$0xff]  ;;  %p1595_p11 = pnand %p1594_p4, %p1977_p6  ;;  %s1599_s10 = scalar_lea.vmem %s1598_s23, 2048 }
  0x6c   : > { %1247 = vmatpush3.bf16.msra.mxu0 %v1424_v1  ;;  %1270 = vmatprep.subr.bf16.mxu1 %v1432_v9  ;;  %v348_v18 = vld [vmem:[%s1858_s19 + $0x20] sm:$0xff]  ;;  %v349_v19 = vld [vmem:[%s1858_s19 + $0x28] sm:$0xff]  ;;  %v353_v20 = vpack.c.bf16 %v347_v17, %v346_v16  ;;  %v350_v22 = vld [vmem:[%s1858_s19 + $0x30] sm:$0xff]  ;;  %p1600_p3 = scmp.lt.s32.totalorder %s1908_s22, %s1598_s23  ;;  %p1601_p0 = scmp.lt.s32.totalorder %s1599_s10, %s1593_s9 }
  0x6d   : > { %1248 = vmatprep.subr.bf16.mxu0 %v1425_v2  ;;  %v354_v21 = vpack.c.bf16 %v349_v19, %v348_v18  ;;  %v351_v23 = vld [vmem:[%s1858_s19 + $0x38] sm:$0xff]  ;;  %v1436_v25 = vld [vmem:[#allocation7 + $0x10] sm:$0xff]   ;;  %v1437_v26 = vld [vmem:[#allocation7 + $0x8] sm:$0xff]   ;;  %s1906_s19 = scalar_lea.hbm %s1957_s7, %s1195_s15  ;;  %p1596_p13 = pneg %p1595_p11 }
  0x6e   : > { %v355_v24 = vpack.c.bf16 %v351_v23, %v350_v22  ;;  %v1438_v27 = vld [vmem:[#allocation7] sm:$0xff]   ;;  %v1439_v28 = vld [vmem:[#allocation7 + $0x78] sm:$0xff]   ;;  %v1440_v29 = vld [vmem:[#allocation7 + $0x70] sm:$0xff]   ;;  %p1602_p7 = por %p1601_p0, %p1600_p3 }
  0x6f   : > { %1271 = vmatpush3.bf16.msra.mxu1 %v1432_v9  ;;  %v1441_v30 = vld [vmem:[#allocation7 + $0x68] sm:$0xff]   ;;  %v1442_v31 = vld [vmem:[#allocation7 + $0x60] sm:$0xff]   ;;  %v1443_v32 = vld [vmem:[#allocation7 + $0x58] sm:$0xff]  }
  0x70   : > { %1249 = vmatpush3.bf16.msra.mxu0 %v1425_v2  ;;  %1272 = vmatprep.subr.bf16.mxu1 %v1433_v11  ;;  %v1152_v36 = vld [vmem:[%s1952_s2] ss:$0 sm:$0xff]  ;;  %v1444_v54 = vld [vmem:[#allocation7 + $0x50] sm:$0xff]   ;;  %v1445_v55 = vld [vmem:[#allocation7 + $0x48] sm:$0xff]   ;;  %p1603_p9 = pnand %p1602_p7, %p1596_p13 }
  0x71   : > { %1250 = vmatprep.subr.bf16.mxu0 %v1426_v3  ;;  %v1446_v56 = vld [vmem:[#allocation7 + $0x40] sm:$0xff]   ;;  %v1447_v57 = vld [vmem:[#allocation8 + $0x38] sm:$0xff]   ;;  %v1448_v58 = vld [vmem:[#allocation8 + $0x30] sm:$0xff]  }
  0x72   : > { %v1449_v59 = vld [vmem:[#allocation8 + $0x28] sm:$0xff]   ;;  %v1450_v60 = vld [vmem:[#allocation8 + $0x20] sm:$0xff]   ;;  %v1451_v61 = vld [vmem:[#allocation8 + $0x18] sm:$0xff]  }
  0x73   : > { %1273 = vmatpush3.bf16.msra.mxu1 %v1433_v11  ;;  %v1161_v0 = vld [vmem:[%s1954_s4] ss:$0 sm:$0xff] }
  0x74   : > { %1251 = vmatpush3.bf16.msra.mxu0 %v1426_v3  ;;  %1274 = vmatprep.subr.bf16.mxu1 %v1434_v12 }
  0x75   : > { %1252 = vmatprep.subr.bf16.mxu0 %v1427_v7 }
  0x77   : > { %1275 = vmatpush3.bf16.msra.mxu1 %v1434_v12 }
  0x78   : > { %1253 = vmatpush3.bf16.msra.mxu0 %v1427_v7  ;;  %1276 = vmatprep.subr.bf16.mxu1 %v1435_v14 }
  0x79   : > { %1254 = vmatprep.subr.bf16.mxu0 %v1428_v10 }
  0x7b   : > { %1277 = vmatpush3.bf16.msra.mxu1 %v1435_v14 }
  0x7c   : > { %1255 = vmatpush3.bf16.msra.mxu0 %v1428_v10  ;;  %1278 = vmatprep.subr.bf16.mxu1 %v1436_v25 }
  0x7d   : > { %1256 = vmatprep.subr.bf16.mxu0 %v1429_v13 }
  0x7f   : > { %1279 = vmatpush3.bf16.msra.mxu1 %v1436_v25 }
  0x80   : > { %1257 = vmatpush3.bf16.msra.mxu0 %v1429_v13  ;;  %1280 = vmatprep.subr.bf16.mxu1 %v1437_v26 }
  0x81   : > { %1258 = vmatprep.subr.bf16.mxu0 %v1430_v15 }
  0x83   : > { %1281 = vmatpush3.bf16.msra.mxu1 %v1437_v26 }
  0x84   : > { %1259 = vmatpush3.bf16.msra.mxu0 %v1430_v15  ;;  %1282 = vmatprep.subr.bf16.mxu1 %v1438_v27 }
  0x85   : > { %1292 = vmatprep.subr.bf16.mxu0 %v1439_v28 }
  0x87   : > { %1261 = vmatmul.mubr.bf16.vlgmr.msra.gmra.mxu0 %v353_v20  ;;  %1283 = vmatpush3.bf16.msra.mxu1 %v1438_v27  ;;  %v1452_v27 = vld [vmem:[#allocation8 + $0x10] sm:$0xff]  }
  0x88   : > { %1264 = vmatprep.mubr.bf16.mxu0 %v354_v21  ;;  %1293 = vmatpush3.bf16.msra.mxu0 %v1439_v28  ;;  %v1453_v28 = vld [vmem:[#allocation8 + $0x8] sm:$0xff]  }
  0x89   : > { %1294 = vmatprep.subr.bf16.mxu0 %v1440_v29  ;;  %1316 = vmatprep.subr.bf16.mxu1 %v1447_v57 }
  0x8c   : > { %1295 = vmatpush3.bf16.msra.mxu0 %v1440_v29  ;;  %v1454_v29 = vld [vmem:[#allocation8] sm:$0xff]  }
  0x8d   : > { %1296 = vmatprep.subr.bf16.mxu0 %v1441_v30 }
  0x8f   : > { %1265 = vmatmul.mubr.bf16.gmra.mxu0 %v355_v24 }
  0x90   : > { %1297 = vmatpush3.bf16.msra.mxu0 %v1441_v30 }
  0x91   : > { %1298 = vmatprep.subr.bf16.mxu0 %v1442_v31 }
  0x94   : > { %1299 = vmatpush3.bf16.msra.mxu0 %v1442_v31 }
  0x95   : > { %1300 = vmatprep.subr.bf16.mxu0 %v1443_v32 }
  0x98   : > { %1301 = vmatpush3.bf16.msra.mxu0 %v1443_v32  ;;  %v1171_v32 = vld [vmem:[%s1954_s4 + $0x1] ss:$0 sm:$0xff] }
  0x99   : > { %1302 = vmatprep.subr.bf16.mxu0 %v1444_v54 }
  0x9c   : > { %1303 = vmatpush3.bf16.msra.mxu0 %v1444_v54 }
  0x9d   : > { %1304 = vmatprep.subr.bf16.mxu0 %v1445_v55 }
  0xa0   : > { %1305 = vmatpush3.bf16.msra.mxu0 %v1445_v55 }
  0xa1   : > { %1306 = vmatprep.subr.bf16.mxu0 %v1446_v56 }
  0xa4   : > { %1307 = vmatpush3.bf16.msra.mxu0 %v1446_v56 }
 0x147   : > { %v1262_v33 = vpop.f32.mrf.mxu0 }
 0x148   : > { %v470_v41 = vadd.f32 %v1262_v33, %v1152_v36 }
 0x149   : > { %v461_v34 = vpop.f32.mrf.mxu0 }
 0x14a   : > { %v462_v39 = vadd.f32 %v1152_v36, %v461_v34 }
 0x14b   : > { %v1263_v35 = vpop.f32.mrf.mxu0 }
 0x14c   : > { %v473_v37 = vadd.f32 %v1263_v35, %v1152_v36 }
 0x14d   : > { %v464_v38 = vpop.f32.mrf.mxu0 }
 0x14e   : > { %v465_v40 = vadd.f32 %v1152_v36, %v464_v38  ;;  %v493_v44 = vpack.c.bf16 %v473_v37, %v470_v41 }
 0x14f   : > { %v1266_v42 = vpop.f32.mrf.mxu0 }
 0x150   : > { %v492_v43 = vpack.c.bf16 %v465_v40, %v462_v39  ;;  %v486_v51 = vadd.f32 %v1266_v42, %v1152_v36 }
 0x151   : > { %v477_v45 = vpop.f32.mrf.mxu0 }
 0x152   : > { %1284 = vmatprep.mubr.bf16.mxu1 %v492_v43  ;;  %v478_v49 = vadd.f32 %v1152_v36, %v477_v45 }
 0x153   : > { %v1267_v46 = vpop.f32.mrf.mxu0  ;;  %1285 = vmatmul.mubr.bf16.vlgmr.msra.gmra.mxu1 %v493_v44 }
 0x154   : > { %v489_v47 = vadd.f32 %v1267_v46, %v1152_v36  ;;  %1317 = vmatpush3.bf16.msra.mxu1 %v1447_v57 }
 0x155   : > { %v480_v48 = vpop.f32.mrf.mxu0  ;;  %1318 = vmatprep.subr.bf16.mxu1 %v1448_v58 }
 0x156   : > { %v481_v50 = vadd.f32 %v1152_v36, %v480_v48  ;;  %v495_v53 = vpack.c.bf16 %v489_v47, %v486_v51 }
 0x158   : > { %v494_v52 = vpack.c.bf16 %v481_v50, %v478_v49  ;;  %1319 = vmatpush3.bf16.msra.mxu1 %v1448_v58 }
 0x159   : > { %1320 = vmatprep.subr.bf16.mxu1 %v1449_v59 }
 0x15a   : > { %1288 = vmatprep.mubr.bf16.mxu1 %v494_v52 }
 0x15b   : > { %1289 = vmatmul.mubr.bf16.gmra.mxu1 %v495_v53 }
 0x15c   : > { %1321 = vmatpush3.bf16.msra.mxu1 %v1449_v59  ;;  %v930_v59 = vlaneseq }
 0x15d   : > { %1322 = vmatprep.subr.bf16.mxu1 %v1450_v60 }
 0x160   : > { %1323 = vmatpush3.bf16.msra.mxu1 %v1450_v60  ;;  %v931_v60 = vand.u32 127, %v930_v59 }
 0x161   : > { %1324 = vmatprep.subr.bf16.mxu1 %v1451_v61 }
 0x162   : > { %vm932_vm0 = vcmp.lt.s32.totalorder %v931_v60, 8 }
 0x164   : > { %1325 = vmatpush3.bf16.msra.mxu1 %v1451_v61  ;;  %v1180_v61 = vld [vmem:[%s1956_s6] ss:$0 sm:$0xff] }
 0x165   : > { %1326 = vmatprep.subr.bf16.mxu1 %v1452_v27 }
 0x168   : > { %1327 = vmatpush3.bf16.msra.mxu1 %v1452_v27 }
 0x169   : > { %1328 = vmatprep.subr.bf16.mxu1 %v1453_v28 }
 0x16c   : > { %1329 = vmatpush3.bf16.msra.mxu1 %v1453_v28 }
 0x16d   : > { %1330 = vmatprep.subr.bf16.mxu1 %v1454_v29 }
 0x170   : > { %1331 = vmatpush3.bf16.msra.mxu1 %v1454_v29 }
 0x213   : > { %v1286_v62 = vpop.f32.mrf.mxu1 }
 0x214   : > { %v610_v4 = vadd.f32 %v1286_v62, %v1161_v0 }
 0x215   : > { %v601_v63 = vpop.f32.mrf.mxu1 }
 0x216   : > { %v602_v2 = vadd.f32 %v1161_v0, %v601_v63  ;;  %v634_v11 = vmax.f32 %v610_v4, 0.0 }
 0x217   : > { %v1287_v1 = vpop.f32.mrf.mxu1 }
 0x218   : > { %v613_v3 = vadd.f32 %v1287_v1, %v1161_v0  ;;  %v632_v9 = vmax.f32 %v602_v2, 0.0 }
 0x219   : > { %v604_v5 = vpop.f32.mrf.mxu1 }
 0x21a   : > { %v605_v6 = vadd.f32 %v1161_v0, %v604_v5  ;;  %v635_v7 = vmax.f32 %v613_v3, 0.0 }
 0x21b   : > { %v1290_v8 = vpop.f32.mrf.mxu1 }
 0x21c   : > { %v633_v10 = vmax.f32 %v605_v6, 0.0  ;;  %v641_v14 = vpack.c.bf16 %v635_v7, %v634_v11  ;;  %v626_v18 = vadd.f32 %v1290_v8, %v1161_v0 }
 0x21d   : > { %v617_v12 = vpop.f32.mrf.mxu1 }
 0x21e   : > { %v640_v13 = vpack.c.bf16 %v633_v10, %v632_v9  ;;  %v618_v16 = vadd.f32 %v1161_v0, %v617_v12  ;;  %v638_v24 = vmax.f32 %v626_v18, 0.0 }
 0x21f   : > { %v1291_v15 = vpop.f32.mrf.mxu1 }
 0x220   : > { %v629_v17 = vadd.f32 %v1291_v15, %v1161_v0  ;;  %1308 = vmatprep.mubr.bf16.mxu0 %v640_v13  ;;  %v636_v22 = vmax.f32 %v618_v16, 0.0 }
 0x221   : > { %v620_v19 = vpop.f32.mrf.mxu1  ;;  %1309 = vmatmul.mubr.bf16.vlgmr.msra.gmra.mxu0 %v641_v14 }
 0x222   : > { %v621_v20 = vadd.f32 %v1161_v0, %v620_v19  ;;  %v639_v21 = vmax.f32 %v629_v17, 0.0 }
 0x224   : > { %v637_v23 = vmax.f32 %v621_v20, 0.0  ;;  %v643_v26 = vpack.c.bf16 %v639_v21, %v638_v24 }
 0x226   : > { %v642_v25 = vpack.c.bf16 %v637_v23, %v636_v22 }
 0x228   : > { %1312 = vmatprep.mubr.bf16.mxu0 %v642_v25 }
 0x229   : > { %1313 = vmatmul.mubr.bf16.gmra.mxu0 %v643_v26 }
 0x2e1   : > { %v1310_v30 = vpop.f32.mrf.mxu0 }
 0x2e2   : > { %v760_v36 = vadd.f32 %v1310_v30, %v1171_v32 }
 0x2e3   : > { %v751_v31 = vpop.f32.mrf.mxu0 }
 0x2e4   : > { %v752_v34 = vadd.f32 %v1171_v32, %v751_v31  ;;  %v784_v43 = vmax.f32 %v760_v36, 0.0 }
 0x2e5   : > { %v1311_v33 = vpop.f32.mrf.mxu0 }
 0x2e6   : > { %v763_v35 = vadd.f32 %v1311_v33, %v1171_v32  ;;  %v782_v41 = vmax.f32 %v752_v34, 0.0 }
 0x2e7   : > { %v754_v37 = vpop.f32.mrf.mxu0 }
 0x2e8   : > { %v755_v38 = vadd.f32 %v1171_v32, %v754_v37  ;;  %v785_v39 = vmax.f32 %v763_v35, 0.0 }
 0x2e9   : > { %v1314_v40 = vpop.f32.mrf.mxu0 }
 0x2ea   : > { %v783_v42 = vmax.f32 %v755_v38, 0.0  ;;  %v791_v46 = vpack.c.bf16 %v785_v39, %v784_v43  ;;  %v776_v50 = vadd.f32 %v1314_v40, %v1171_v32 }
 0x2eb   : > { %v767_v44 = vpop.f32.mrf.mxu0 }
 0x2ec   : > { %v790_v45 = vpack.c.bf16 %v783_v42, %v782_v41  ;;  %v768_v48 = vadd.f32 %v1171_v32, %v767_v44  ;;  %v788_v56 = vmax.f32 %v776_v50, 0.0 }
 0x2ed   : > { %v1315_v47 = vpop.f32.mrf.mxu0 }
 0x2ee   : > { %v779_v49 = vadd.f32 %v1315_v47, %v1171_v32  ;;  %1332 = vmatprep.mubr.bf16.mxu1 %v790_v45  ;;  %v786_v54 = vmax.f32 %v768_v48, 0.0 }
 0x2ef   : > { %v770_v51 = vpop.f32.mrf.mxu0  ;;  %1333 = vmatmul.mubr.bf16.vlgmr.msra.gmra.mxu1 %v791_v46 }
 0x2f0   : > { %v771_v52 = vadd.f32 %v1171_v32, %v770_v51  ;;  %v789_v53 = vmax.f32 %v779_v49, 0.0 }
 0x2f2   : > { %v787_v55 = vmax.f32 %v771_v52, 0.0  ;;  %v793_v58 = vpack.c.bf16 %v789_v53, %v788_v56 }
 0x2f4   : > { %v792_v57 = vpack.c.bf16 %v787_v55, %v786_v54 }
 0x2f6   : > { %1336 = vmatprep.mubr.bf16.mxu1 %v792_v57 }
 0x2f7   : > { %1337 = vmatmul.mubr.bf16.gmra.mxu1 %v793_v58 }
 0x3af   : > { %v1334_v62 = vpop.f32.mrf.mxu1 }
 0x3b0   : > { %v908_v63 = vadd.f32 %v1334_v62, %v1180_v61 }
 0x3b1   : > { %v899_v0 = vpop.f32.mrf.mxu1 }
 0x3b2   : > { %v900_v1 = vadd.f32 %v1180_v61, %v899_v0  ;;  %v935_v2 = vsel %vm932_vm0, %v908_v63, -1e+30 }
 0x3b3   : > { %945 = vmax.xlane.f32.xlu1 %v935_v2  ;;  %v1335_v3 = vpop.f32.mrf.mxu1 }
 0x3b4   : > { %v911_v4 = vadd.f32 %v1335_v3, %v1180_v61  ;;  %v933_v5 = vsel %vm932_vm0, %v900_v1, -1e+30 }
 0x3b5   : > { %v902_v6 = vpop.f32.mrf.mxu1  ;;  %941 = vmax.xlane.f32.xlu0 %v933_v5 }
 0x3b6   : > { %v903_v7 = vadd.f32 %v1180_v61, %v902_v6  ;;  %v936_v8 = vsel %vm932_vm0, %v911_v4, -1e+30 }
 0x3b7   : > { %947 = vmax.xlane.f32.xlu1 %v936_v8  ;;  %v1338_v9 = vpop.f32.mrf.mxu1 }
 0x3b8   : > { %v934_v10 = vsel %vm932_vm0, %v903_v7, -1e+30  ;;  %v924_v14 = vadd.f32 %v1338_v9, %v1180_v61 }
 0x3b9   : > { %v915_v11 = vpop.f32.mrf.mxu1  ;;  %943 = vmax.xlane.f32.xlu0 %v934_v10 }
 0x3ba   : > { %v916_v12 = vadd.f32 %v1180_v61, %v915_v11  ;;  %v939_v20 = vsel %vm932_vm0, %v924_v14, -1e+30 }
 0x3bb   : > { %v1339_v13 = vpop.f32.mrf.mxu1 }
 0x3bc   : > { %v937_v15 = vsel %vm932_vm0, %v916_v12, -1e+30  ;;  %v927_v18 = vadd.f32 %v1339_v13, %v1180_v61 }
 0x3bd   : > { %v918_v16 = vpop.f32.mrf.mxu1  ;;  %949 = vmax.xlane.f32.xlu0 %v937_v15 }
 0x3be   : > { %v919_v17 = vadd.f32 %v1180_v61, %v918_v16  ;;  %v940_v21 = vsel %vm932_vm0, %v927_v18, -1e+30 }
 0x3c0   : > { %v938_v19 = vsel %vm932_vm0, %v919_v17, -1e+30 }
 0x3c1   : > { %951 = vmax.xlane.f32.xlu1 %v938_v19  ;;  %953 = vmax.xlane.f32.xlu0 %v939_v20 }
 0x3c5   : > { %955 = vmax.xlane.f32.xlu1 %v940_v21 }
 0x43c   : > { %v946_v22 = vpop.xlane.xlu1 %945 }
 0x43d   : > { %v959_v23 = vsub.f32 %v935_v2, %v946_v22 }
 0x43e   : > { %v942_v24 = vpop.xlane.xlu0 %941 }
 0x43f   : > { %v969_v25 = vmul.f32 1.442695, %v959_v23  ;;  %v957_v26 = vsub.f32 %v933_v5, %v942_v24 }
 0x440   : > { %v948_v27 = vpop.xlane.xlu1 %947 }
 0x441   : > { %1455 = vpow2.f32 %v969_v25  ;;  %v965_v28 = vmul.f32 1.442695, %v957_v26  ;;  %v960_v29 = vsub.f32 %v936_v8, %v948_v27 }
 0x442   : > { %v944_v30 = vpop.xlane.xlu0 %943 }
 0x443   : > { %v971_v31 = vmul.f32 1.442695, %v960_v29  ;;  %v958_v32 = vsub.f32 %v934_v10, %v944_v30  ;;  %1457 = vpow2.f32 %v965_v28 }
 0x445   : > { %1459 = vpow2.f32 %v971_v31  ;;  %v967_v33 = vmul.f32 1.442695, %v958_v32 }
 0x446   : > { %v950_v34 = vpop.xlane.xlu0 %949 }
 0x447   : > { %v961_v35 = vsub.f32 %v937_v15, %v950_v34  ;;  %1461 = vpow2.f32 %v967_v33 }
 0x449   : > { %v973_v36 = vmul.f32 1.442695, %v961_v35 }
 0x44a   : > { %v952_v37 = vpop.xlane.xlu1 %951  ;;  %v954_v38 = vpop.xlane.xlu0 %953 }
 0x44b   : > { %1463 = vpow2.f32 %v973_v36  ;;  %v962_v39 = vsub.f32 %v938_v19, %v952_v37  ;;  %v963_v40 = vsub.f32 %v939_v20, %v954_v38 }
 0x44d   : > { %v975_v41 = vmul.f32 1.442695, %v962_v39  ;;  %v977_v42 = vmul.f32 1.442695, %v963_v40 }
 0x44e   : > { %v1456_v43 = vpop.eup %1455  ;;  %v956_v44 = vpop.xlane.xlu1 %955 }
 0x44f   : > { %1465 = vpow2.f32 %v975_v41  ;;  %v964_v45 = vsub.f32 %v940_v21, %v956_v44  ;;  %985 = vadd.xlane.f32.xlu0 %v1456_v43 }
 0x450   : > { %1467 = vpow2.f32 %v977_v42  ;;  %v1458_v46 = vpop.eup %1457 }
 0x451   : > { %v979_v47 = vmul.f32 1.442695, %v964_v45 }
 0x452   : > { %v1460_v48 = vpop.eup %1459 }
 0x453   : > { %1469 = vpow2.f32 %v979_v47  ;;  %987 = vadd.xlane.f32.xlu1 %v1460_v48  ;;  %981 = vadd.xlane.f32.xlu0 %v1458_v46 }
 0x454   : > { %v1462_v49 = vpop.eup %1461 }
 0x457   : > { %983 = vadd.xlane.f32.xlu1 %v1462_v49 }
 0x458   : > { %v1464_v50 = vpop.eup %1463 }
 0x459   : > { %989 = vadd.xlane.f32.xlu0 %v1464_v50 }
 0x45c   : > { %v1466_v51 = vpop.eup %1465 }
 0x45d   : > { %v1468_v52 = vpop.eup %1467  ;;  %991 = vadd.xlane.f32.xlu1 %v1466_v51 }
 0x45e   : > { %993 = vadd.xlane.f32.xlu0 %v1468_v52 }
 0x460   : > { %v1470_v53 = vpop.eup %1469 }
 0x461   : > { %995 = vadd.xlane.f32.xlu1 %v1470_v53 }
 0x4d8   : > { %v986_v54 = vpop.xlane.xlu0 %985 }
 0x4d9   : > { %1471 = vrcp.f32 %v986_v54 }
 0x4dc   : > { %v988_v55 = vpop.xlane.xlu1 %987  ;;  %v982_v56 = vpop.xlane.xlu0 %981 }
 0x4dd   : > { %1473 = vrcp.f32 %v988_v55 }
 0x4de   : > { %1475 = vrcp.f32 %v982_v56 }
 0x4e0   : > { %v984_v57 = vpop.xlane.xlu1 %983 }
 0x4e1   : > { %1477 = vrcp.f32 %v984_v57 }
 0x4e2   : > { %v990_v58 = vpop.xlane.xlu0 %989 }
 0x4e3   : > { %1479 = vrcp.f32 %v990_v58 }
 0x4e6   : > { %v1472_v59 = vpop.eup %1471  ;;  %v992_v60 = vpop.xlane.xlu1 %991 }
 0x4e7   : > { %v1007_v61 = vmul.f32 %v1472_v59, %v1456_v43  ;;  %1481 = vrcp.f32 %v992_v60  ;;  %v994_v62 = vpop.xlane.xlu0 %993 }
 0x4e8   : > { %1483 = vrcp.f32 %v994_v62 }
 0x4e9   : > { %1015 = vst [vmem:[%s340_s12 + $0x10] sm:$0xff] %v1007_v61 }
 0x4ea   : > { %v1474_v63 = vpop.eup %1473  ;;  %v996_v0 = vpop.xlane.xlu1 %995 }
 0x4eb   : > { %v1476_v1 = vpop.eup %1475  ;;  %v1008_v2 = vmul.f32 %v1474_v63, %v1460_v48  ;;  %1485 = vrcp.f32 %v996_v0 }
 0x4ec   : > { %v1005_v3 = vmul.f32 %v1476_v1, %v1458_v46 }
 0x4ed   : > { %1016 = vst [vmem:[%s340_s12 + $0x18] sm:$0xff] %v1008_v2 }
 0x4ee   : > { %v1478_v4 = vpop.eup %1477  ;;  %1013 = vst [vmem:[%s340_s12] sm:$0xff] %v1005_v3 }
 0x4ef   : > { %v1006_v5 = vmul.f32 %v1478_v4, %v1462_v49 }
 0x4f0   : > { %v1480_v6 = vpop.eup %1479 }
 0x4f1   : > { %1014 = vst [vmem:[%s340_s12 + $0x8] sm:$0xff] %v1006_v5  ;;  %v1009_v7 = vmul.f32 %v1480_v6, %v1464_v50 }
 0x4f3   : > { %1017 = vst [vmem:[%s340_s12 + $0x20] sm:$0xff] %v1009_v7 }
 0x4f4   : > { %v1482_v8 = vpop.eup %1481 }
 0x4f5   : > { %v1484_v9 = vpop.eup %1483  ;;  %v1010_v10 = vmul.f32 %v1482_v8, %v1466_v51 }
 0x4f6   : > { %v1011_v11 = vmul.f32 %v1484_v9, %v1468_v52 }
 0x4f7   : > { %1018 = vst [vmem:[%s340_s12 + $0x28] sm:$0xff] %v1010_v10 }
 0x4f8   : > { %v1486_v12 = vpop.eup %1485  ;;  %1019 = vst [vmem:[%s340_s12 + $0x30] sm:$0xff] %v1011_v11 }
 0x4f9   : > { %v1012_v13 = vmul.f32 %v1486_v12, %v1470_v53 }
 0x4fb   : > { %1020 = vst [vmem:[%s340_s12 + $0x38] sm:$0xff] %v1012_v13 }
 0x4fc   : > { %1606 = shalt.err (!%p1603_p9)
}
 0x4fd   : > { %s1607_s11 = scalar_lea.hbm %s1906_s19, 1024  ;;  %s1611_s29 = scalar_lea.hbm %s1957_s7, 4096 }
 0x4fe   : > { %p1608_p1 = scmp.ne.s32.totalorder %s1906_s19, %s1607_s11  ;;  %p1612_p10 = scmp.lt.s32.totalorder %s1906_s19, %s1957_s7 }
 0x4ff   : > { %p1613_p12 = scmp.lt.s32.totalorder %s1611_s29, %s1607_s11 }
 0x500   : > { %p1609_p8 = pnand %p1608_p1, %p1977_p6 }
 0x501   : > { %p1614_p2 = por %p1613_p12, %p1612_p10 }
 0x502   : > { %p1610_p5 = pneg %p1609_p8 }
 0x504   : > { %p1615_p4 = pnand %p1614_p2, %p1610_p5 }
 0x506   : > { %1618 = shalt.err (!%p1615_p4)
}
 0x507   : > { %s1676_s1 = smov 128   ;;  %s1677_s18 = smov 8  }
 0x508   : > { %1354 = dma.vmem_to_hbm [thread:$0]  (%p1977_p6), %s1908_s22, 1024, %s1906_s19, %s1022_s30, %s1676_s1, %s1676_s1, %s1677_s18  }
 0x509 PF: > { %p1381_p11 = scmp.ge.s32.totalorder %s1665_s27, 2  ;;  %s1050_s9 = sand.u32 1, %s1653_s24  }
 0x50a   : > { %p1978_p13 = scmp.ne.s32.totalorder %s1964_s8, 0  ;;  %s1051_s28 = scalar_lea.sflag [#allocation4], %s1050_s9 }
 0x50c   : > { %p1371_p3 = pnand %p1381_p11, %p1978_p13 }
 0x50e   : > { %p1372_p0 = pneg %p1371_p3 }
 0x510   : > { %1648 = dma.done.wait (%p1372_p0), %s1051_s28, 1024  }
 0x511   : > { %1650 = vsyncadd (%p1372_p0), %s1051_s28, 4294966272  ;;  %p22_p7 = scmp.ge.s32.totalorder %s1797_s14, 6   ;;  %s1979_s24 = smov %s1657_s25 }
 0x512   : > { %s1980_s25 = smov %s1661_s26  ;;  %s1981_s26 = smov %s1807_s17 }
 0x513   : > { %s1982_s27 = smov %s1797_s14  ;;  %24 = sbr.rel (!%p22_p7) target bundleno = 9 (0x9), region = 107 }
 0x518   :  { %1056 = vsyncpa [#allocation3], 1 }
 0x519   :  { %1058 = vsyncpa [#allocation3 + $0x1], 1 }
 0x51a   :  { %1059 = vsyncpa [#allocation6], 1 }
 0x51b   :  { %1060 = vsyncpa [#allocation9], 1 }
 0x51c   :  { %1061 = vsyncpa [#allocation4], 1 }
 0x51d   :  { %1063 = vsyncpa [#allocation4 + $0x1], 1 }

</bundles_post_ra>
